<compile_context>
chip_gen: v6e
topology: v6e:2x2x1
jax: 0.10.0
libtpu: 0.0.40
codegen_flags: <defaults>
</compile_context>

<pallas_src>
import functools

import jax
import jax.numpy as jnp
from jax.experimental import pallas as pl
from jax.experimental.pallas import tpu as pltpu


_INV_SQRT2 = 0.7071067811865476


# --------------------------------------------------------------------------- #
# Kernel
# --------------------------------------------------------------------------- #
def _mlp_kernel(x_ref, w1_ref, b1_ref, w2_ref, b2_ref, o_ref, *acc):
    # When no scratch is passed (f32 output) accumulate directly into o_ref.
    acc_ref = acc[0] if acc else o_ref
    k = pl.program_id(1)

    # fc1 over this hidden chunk (MXU inputs in compute dtype, f32 accumulation)
    h = jnp.dot(x_ref[...], w1_ref[...], preferred_element_type=jnp.float32)
    h = h + b1_ref[...]
    # exact (erf) GELU in f32 -- matches PyTorch nn.GELU default
    h = 0.5 * h * (1.0 + jax.lax.erf(h * _INV_SQRT2))
    # fc2 partial for this hidden chunk
    part = jnp.dot(h.astype(w2_ref.dtype), w2_ref[...],
                   preferred_element_type=jnp.float32)

    @pl.when(k == 0)
    def _():
        acc_ref[...] = part            # no zero-fill; direct write on first chunk

    @pl.when(k > 0)
    def _():
        acc_ref[...] += part

    @pl.when(k == pl.num_programs(1) - 1)
    def _():
        o_ref[...] = (acc_ref[...] + b2_ref[...]).astype(o_ref.dtype)


# --------------------------------------------------------------------------- #
# Helpers
# --------------------------------------------------------------------------- #
def _round_up(x, m):
    return (x + m - 1) // m * m


def _pad2d(a, rows, cols, dtype):
    a = a.astype(dtype)
    pr, pc = rows - a.shape[0], cols - a.shape[1]
    if pr or pc:
        a = jnp.pad(a, ((0, pr), (0, pc)))
    return a


@functools.lru_cache(maxsize=None)
def _chip_info():
    """(vmem_capacity_bytes_per_core, num_tensorcores, generation_tag) with safe fallbacks."""
    vmem = None
    try:
        info = pltpu.get_tpu_info()
        v = int(getattr(info, "vmem_capacity_bytes", 0) or 0)
        vmem = v if v > 0 else None
    except Exception:
        vmem = None
    kind = ""
    try:
        kind = (getattr(jax.devices()[0], "device_kind", "") or "").lower()
    except Exception:
        pass
    if "v7" in kind:
        gen, num_tc, default_vmem = "v7x", 2, 64 << 20
    elif "v6" in kind:
        gen, num_tc, default_vmem = "v6e", 1, 128 << 20
    elif "v5p" in kind:
        gen, num_tc, default_vmem = "v5p", 2, 128 << 20
    elif "v5" in kind:
        gen, num_tc, default_vmem = "v5e", 1, 128 << 20
    elif "v4" in kind:
        gen, num_tc, default_vmem = "v4", 2, 64 << 20
    else:
        gen, num_tc, default_vmem = "unknown", 1, 64 << 20
    return (vmem if vmem is not None else default_vmem), num_tc, gen


def prepare_mlp_params(w1, b1, w2, b2, *, compute_dtype=jnp.bfloat16):
    """One-time (load-time) weight prep: cast to the MXU compute dtype and zero-pad
    every feature dim to a multiple of 128.  Hoisted out of the per-call hot path so
    forward passes never re-read/re-write the full weights in HBM just to pad them."""
    w1 = jnp.asarray(w1)
    w2 = jnp.asarray(w2)
    b1 = jnp.asarray(b1).reshape(1, -1)
    b2 = jnp.asarray(b2).reshape(1, -1)
    d_in, d_hid = w1.shape
    d_out = w2.shape[1]
    d_in_p, d_hid_p, d_out_p = (_round_up(d, 128) for d in (d_in, d_hid, d_out))
    return {
        "w1": _pad2d(w1, d_in_p, d_hid_p, compute_dtype),
        "b1": _pad2d(b1, 1, d_hid_p, jnp.float32),
        "w2": _pad2d(w2, d_hid_p, d_out_p, compute_dtype),
        "b2": _pad2d(b2, 1, d_out_p, jnp.float32),
        "d_out": int(d_out),
    }


# --------------------------------------------------------------------------- #
# pallas_call wrapper
# --------------------------------------------------------------------------- #
@functools.partial(jax.jit, static_argnames=("d_out", "tm", "tk_cap", "weight_buffering"))
def mlp_pallas(x, w1_p, b1_p, w2_p, b2_p, *, d_out, tm=None, tk_cap=512,
               weight_buffering=2):
    """x: (M, in_features) -> (M, out_features).  Weights must come from prepare_mlp_params."""
    M, _ = x.shape
    d_in_p, d_hid_p = w1_p.shape
    d_out_p = w2_p.shape[1]
    compute_dtype = w1_p.dtype
    out_dtype = x.dtype
    itemsize = jnp.dtype(compute_dtype).itemsize
    out_itemsize = jnp.dtype(out_dtype).itemsize

    vmem_cap, num_tc, gen = _chip_info()
    # ~84% of physical VMEM: ~54 MiB on v7x (64 MiB/TC), ~107 MiB on v5e/v6e (128 MiB).
    budget = int(vmem_cap * 0.84)

    # ---- generation-aware default row tile ----------------------------------
    if tm is None:
        # v6e: tm=1024 doubles arithmetic intensity (weights re-streamed per row tile)
        # and flips the kernel compute-bound; v7x/v5e stay at 512.
        tm = 1024 if (gen == "v6e" and M >= 1024) else 512

    row_align = 8 if itemsize >= 4 else (16 if itemsize == 2 else 32)
    M_al = _round_up(M, row_align)
    tm_eff = max(row_align, min(_round_up(tm, row_align), M_al))
    # Split the row range only on chips that actually have >=2 TensorCores; on
    # single-TC v5e/v6e halving tm just re-streams W1/W2 twice for no gain.
    if num_tc >= 2 and M_al <= tm_eff and tm_eff >= 2 * row_align:
        tm_eff = _round_up(tm_eff // 2, row_align)

    use_acc_scratch = jnp.dtype(out_dtype) != jnp.dtype(jnp.float32)

    # ---- hidden-chunk width: largest 128-multiple <= tk_cap dividing d_hid_p -
    tk = d_hid_p
    if d_hid_p > tk_cap:
        for cand in range(_round_up(tk_cap, 128), 0, -128):
            if d_hid_p % cand == 0:
                tk = cand
                break

    # ---- adaptive VMEM fit: shrink tm, then tk, until the double-buffered ----
    # ---- working set fits the chip budget (keeps 2-deep pipelining intact). --
    def _need(tm_, tk_):
        return (2 * tm_ * d_in_p * itemsize            # x tile
                + 2 * d_in_p * tk_ * itemsize          # W1 hidden chunk
                + 2 * tk_ * d_out_p * itemsize         # W2 hidden chunk
                + 2 * (tk_ + d_out_p) * 4              # biases (f32)
                + 2 * tm_ * d_out_p * out_itemsize     # output tile
                + (tm_ * d_out_p * 4 if use_acc_scratch else 0)  # f32 accumulator
                + (2 << 20))                           # Mosaic internal scratch headroom

    while _need(tm_eff, tk) > budget and tm_eff > max(row_align, 128):
        tm_eff = max(row_align, _round_up(tm_eff // 2, row_align))
    while _need(tm_eff, tk) > budget and tk > 128:
        new_tk = tk - 128
        while new_tk > 128 and d_hid_p % new_tk != 0:
            new_tk -= 128
        tk = new_tk
    # TODO(synk): if `need` still exceeds budget (d_in/d_out >= ~8K), add a d_out grid
    # axis instead of shrinking tm further (keeps the MXU fed).

    M_p = _round_up(M, tm_eff)
    grid = (M_p // tm_eff, d_hid_p // tk)

    need = _need(tm_eff, tk)
    vmem_limit = int(min(max(need * 9 // 8, 32 << 20), vmem_cap))

    # ---- pad/cast only the activations per call ------------------------------
    x_p = _pad2d(x, M_p, d_in_p, compute_dtype)

    # ---- cost estimate with real weight re-streaming (once per row tile) -----
    n_row_tiles = M_p // tm_eff
    cost = pl.CostEstimate(
        flops=2 * M_p * (d_in_p * d_hid_p + d_hid_p * d_out_p),
        transcendentals=M_p * d_hid_p,
        bytes_accessed=(x_p.size * itemsize
                        + n_row_tiles * (w1_p.size + w2_p.size) * itemsize
                        + n_row_tiles * (b1_p.size + b2_p.size) * 4
                        + M_p * d_out_p * out_itemsize),
    )

    # Optional deeper weight buffering (e.g. 3 on v5e to hide DMA jitter).
    if weight_buffering is not None and int(weight_buffering) != 2:
        w_spec_kwargs = dict(pipeline_mode=pl.Buffered(int(weight_buffering)))
    else:
        w_spec_kwargs = {}

    scratch_shapes = ([pltpu.VMEM((tm_eff, d_out_p), jnp.float32)]
                      if use_acc_scratch else [])

    y = pl.pallas_call(
        _mlp_kernel,
        out_shape=jax.ShapeDtypeStruct((M_p, d_out_p), out_dtype),
        grid_spec=pltpu.PrefetchScalarGridSpec(
            num_scalar_prefetch=0,
            grid=grid,
            in_specs=[
                pl.BlockSpec((tm_eff, d_in_p), lambda i, k: (i, 0)),          # x rows (resident over k)
                pl.BlockSpec((d_in_p, tk), lambda i, k: (0, k), **w_spec_kwargs),   # W1 chunk
                pl.BlockSpec((1, tk), lambda i, k: (0, k)),                   # b1 chunk
                pl.BlockSpec((tk, d_out_p), lambda i, k: (k, 0), **w_spec_kwargs),  # W2 chunk
                pl.BlockSpec((1, d_out_p), lambda i, k: (0, 0)),              # b2
            ],
            out_specs=pl.BlockSpec((tm_eff, d_out_p), lambda i, k: (i, 0)),
            scratch_shapes=scratch_shapes,
        ),
        compiler_params=pltpu.CompilerParams(
            dimension_semantics=("parallel", "arbitrary"),
            vmem_limit_bytes=vmem_limit,
        ),
        cost_estimate=cost,
    )(x_p, w1_p, b1_p, w2_p, b2_p)

    return y[:M, :d_out]


def mlp_forward(x_bsd, prepped, *, tm=None, tk_cap=512, weight_buffering=2):
    """x_bsd: (B, S, in_features) -> (B, S, out_features). `prepped` from prepare_mlp_params."""
    B, S, d_in = x_bsd.shape
    y = mlp_pallas(x_bsd.reshape(B * S, d_in),
                   prepped["w1"], prepped["b1"], prepped["w2"], prepped["b2"],
                   d_out=prepped["d_out"], tm=tm, tk_cap=tk_cap,
                   weight_buffering=weight_buffering)
    return y.reshape(B, S, prepped["d_out"])


def init_mlp_params(key, in_features, hidden_features, out_features, dtype=jnp.float32):
    # Deterministic synthetic init (mirrors nn.Linear's uniform(-1/sqrt(fan_in), +1/sqrt(fan_in)))
    k1, k2, k3, k4 = jax.random.split(key, 4)
    lim1 = 1.0 / jnp.sqrt(in_features)
    lim2 = 1.0 / jnp.sqrt(hidden_features)
    w1 = jax.random.uniform(k1, (in_features, hidden_features), dtype, -lim1, lim1)
    b1 = jax.random.uniform(k2, (1, hidden_features), dtype, -lim1, lim1)
    w2 = jax.random.uniform(k3, (hidden_features, out_features), dtype, -lim2, lim2)
    b2 = jax.random.uniform(k4, (1, out_features), dtype, -lim2, lim2)
    return w1, b1, w2, b2


if __name__ == "__main__":
    B, S = 2, 8
    in_features = 32
    hidden_features = 64
    out_features = 32

    key = jax.random.PRNGKey(0)
    kx, kp = jax.random.split(key)
    x = jax.random.normal(kx, (B, S, in_features), dtype=jnp.float32)
    w1, b1, w2, b2 = init_mlp_params(kp, in_features, hidden_features, out_features)

    # Pure-JAX f32 reference (exact erf GELU; dropout p=0.0 is an identity no-op).
    h = x.reshape(B * S, in_features) @ w1 + b1
    h = 0.5 * h * (1.0 + jax.lax.erf(h / jnp.sqrt(2.0)))
    ref = (h @ w2 + b2).reshape(B, S, out_features)

    # One-time weight prep (cast + 128-pad) hoisted out of the per-call path.
    prepped_bf16 = prepare_mlp_params(w1, b1, w2, b2, compute_dtype=jnp.bfloat16)
    out = mlp_forward(x, prepped_bf16)          # f32 in/out, bf16 MXU operands
    jax.block_until_ready(out)
    assert out.shape == (B, S, out_features)
    assert jnp.allclose(out, ref, atol=7.5e-2, rtol=7.5e-2), float(jnp.max(jnp.abs(out - ref)))

    # f32 compute path tracks the reference tightly (exercises the scratch-free
    # accumulate-into-o_ref path since out dtype is f32).
    prepped_f32 = prepare_mlp_params(w1, b1, w2, b2, compute_dtype=jnp.float32)
    out_f32 = mlp_forward(x, prepped_f32)
    jax.block_until_ready(out_f32)
    assert jnp.allclose(out_f32, ref, atol=1e-4, rtol=1e-4), float(jnp.max(jnp.abs(out_f32 - ref)))

    # bf16 activations end-to-end (exercises the f32 accumulator scratch path).
    out_bf16 = mlp_forward(x.astype(jnp.bfloat16), prepped_bf16)
    jax.block_until_ready(out_bf16)
    assert out_bf16.dtype == jnp.bfloat16
    assert jnp.allclose(out_bf16.astype(jnp.float32), ref, atol=1.25e-1, rtol=1.25e-1), \
        float(jnp.max(jnp.abs(out_bf16.astype(jnp.float32) - ref)))

    print("KERNEL_OK")
</pallas_src>

<mosaic_0001>
module attributes {stable_mosaic.version = 11 : i64} {
  func.func @_mlp_kernel(%arg0: i32, %arg1: i32, %arg2: memref<16x128xbf16, #tpu.memory_space<vmem>>, %arg3: memref<128x128xbf16, #tpu.memory_space<vmem>>, %arg4: memref<1x128xf32, #tpu.memory_space<vmem>>, %arg5: memref<128x128xbf16, #tpu.memory_space<vmem>>, %arg6: memref<1x128xf32, #tpu.memory_space<vmem>>, %arg7: memref<16x128xf32, #tpu.memory_space<vmem>>) attributes {dimension_semantics = [#tpu.dimension_semantics<parallel>, #tpu.dimension_semantics<arbitrary>], iteration_bounds = array<i64: 1, 1>, scalar_prefetch = 0 : i64, scratch_operands = 0 : i64, tpu.core_type = #tpu.core_type<tc>, window_params = [{transform_indices = @transform_0, window_bounds = array<i64: 16, 128>}, {transform_indices = @transform_1, window_bounds = array<i64: 128, 128>}, {transform_indices = @transform_2, window_bounds = array<i64: 1, 128>}, {transform_indices = @transform_3, window_bounds = array<i64: 128, 128>}, {pipeline_mode = #tpu.pipeline_mode<synchronous>, transform_indices = @transform_4, window_bounds = array<i64: 1, 128>}, {transform_indices = @transform_5, window_bounds = array<i64: 16, 128>}]} {
    %c0 = arith.constant 0 : index
    %c0_0 = arith.constant 0 : index
    %0 = vector.load %arg2[%c0, %c0_0] : memref<16x128xbf16, #tpu.memory_space<vmem>>, vector<16x128xbf16>
    %c0_1 = arith.constant 0 : index
    %c0_2 = arith.constant 0 : index
    %1 = vector.load %arg3[%c0_1, %c0_2] : memref<128x128xbf16, #tpu.memory_space<vmem>>, vector<128x128xbf16>
    %cst = arith.constant dense<0.000000e+00> : vector<16x128xf32>
    %2 = tpu.matmul %0, %1, %cst {dimension_numbers = #tpu.dot_dimension_numbers<[1], [0], [0], [1], [0, 0, 1, 1], [], []>} : vector<16x128xbf16>, vector<128x128xbf16>, vector<16x128xf32> -> vector<16x128xf32>
    %c0_3 = arith.constant 0 : index
    %c0_4 = arith.constant 0 : index
    %3 = vector.load %arg4[%c0_3, %c0_4] : memref<1x128xf32, #tpu.memory_space<vmem>>, vector<1x128xf32>
    %4 = vector.broadcast %3 : vector<1x128xf32> to vector<16x128xf32>
    %5 = arith.addf %2, %4 : vector<16x128xf32>
    %cst_5 = arith.constant 5.000000e-01 : f32
    %6 = vector.broadcast %cst_5 : f32 to vector<16x128xf32>
    %7 = arith.mulf %6, %5 : vector<16x128xf32>
    %cst_6 = arith.constant 0.707106769 : f32
    %8 = vector.broadcast %cst_6 : f32 to vector<16x128xf32>
    %9 = arith.mulf %5, %8 : vector<16x128xf32>
    %10 = math.erf %9 : vector<16x128xf32>
    %cst_7 = arith.constant 1.000000e+00 : f32
    %11 = vector.broadcast %cst_7 : f32 to vector<16x128xf32>
    %12 = arith.addf %11, %10 : vector<16x128xf32>
    %13 = arith.mulf %7, %12 : vector<16x128xf32>
    %14 = arith.truncf %13 : vector<16x128xf32> to vector<16x128xbf16>
    %c0_8 = arith.constant 0 : index
    %c0_9 = arith.constant 0 : index
    %15 = vector.load %arg5[%c0_8, %c0_9] : memref<128x128xbf16, #tpu.memory_space<vmem>>, vector<128x128xbf16>
    %cst_10 = arith.constant dense<0.000000e+00> : vector<16x128xf32>
    %16 = tpu.matmul %14, %15, %cst_10 {dimension_numbers = #tpu.dot_dimension_numbers<[1], [0], [0], [1], [0, 0, 1, 1], [], []>} : vector<16x128xbf16>, vector<128x128xbf16>, vector<16x128xf32> -> vector<16x128xf32>
    %c0_i32 = arith.constant 0 : i32
    %17 = arith.cmpi eq, %arg1, %c0_i32 : i32
    %18 = arith.extui %17 : i1 to i32
    %c0_i32_11 = arith.constant 0 : i32
    %19 = arith.cmpi ne, %18, %c0_i32_11 : i32
    scf.if %19 {
      %c0_16 = arith.constant 0 : index
      %c0_17 = arith.constant 0 : index
      %26 = vector.load %arg7[%c0_16, %c0_17] : memref<16x128xf32, #tpu.memory_space<vmem>>, vector<16x128xf32>
      tpu.vector_store %arg7[%c0_16, %c0_17], %16 {strides = array<i32>} : memref<16x128xf32, #tpu.memory_space<vmem>>, vector<16x128xf32>,
    } else {
    }
    %c0_i32_12 = arith.constant 0 : i32
    %20 = arith.cmpi sgt, %arg1, %c0_i32_12 : i32
    %21 = arith.extui %20 : i1 to i32
    %c0_i32_13 = arith.constant 0 : i32
    %22 = arith.cmpi ne, %21, %c0_i32_13 : i32
    scf.if %22 {
      %c0_16 = arith.constant 0 : index
      %c0_17 = arith.constant 0 : index
      %26 = vector.load %arg7[%c0_16, %c0_17] : memref<16x128xf32, #tpu.memory_space<vmem>>, vector<16x128xf32>
      %27 = arith.addf %26, %16 : vector<16x128xf32>
      %c0_18 = arith.constant 0 : index
      %c0_19 = arith.constant 0 : index
      %28 = vector.load %arg7[%c0_18, %c0_19] : memref<16x128xf32, #tpu.memory_space<vmem>>, vector<16x128xf32>
      tpu.vector_store %arg7[%c0_18, %c0_19], %27 {strides = array<i32>} : memref<16x128xf32, #tpu.memory_space<vmem>>, vector<16x128xf32>,
    } else {
    }
    %c0_i32_14 = arith.constant 0 : i32
    %23 = arith.cmpi eq, %arg1, %c0_i32_14 : i32
    %24 = arith.extui %23 : i1 to i32
    %c0_i32_15 = arith.constant 0 : i32
    %25 = arith.cmpi ne, %24, %c0_i32_15 : i32
    scf.if %25 {
      %c0_16 = arith.constant 0 : index
      %c0_17 = arith.constant 0 : index
      %26 = vector.load %arg7[%c0_16, %c0_17] : memref<16x128xf32, #tpu.memory_space<vmem>>, vector<16x128xf32>
      %c0_18 = arith.constant 0 : index
      %c0_19 = arith.constant 0 : index
      %27 = vector.load %arg6[%c0_18, %c0_19] : memref<1x128xf32, #tpu.memory_space<vmem>>, vector<1x128xf32>
      %28 = vector.broadcast %27 : vector<1x128xf32> to vector<16x128xf32>
      %29 = arith.addf %26, %28 : vector<16x128xf32>
      %c0_20 = arith.constant 0 : index
      %c0_21 = arith.constant 0 : index
      %30 = vector.load %arg7[%c0_20, %c0_21] : memref<16x128xf32, #tpu.memory_space<vmem>>, vector<16x128xf32>
      tpu.vector_store %arg7[%c0_20, %c0_21], %29 {strides = array<i32>} : memref<16x128xf32, #tpu.memory_space<vmem>>, vector<16x128xf32>,
    } else {
    }
    return
  }
  func.func @transform_0(%arg0: i32, %arg1: i32) -> (i32, i32) {
    %c0_i32 = arith.constant 0 : i32
    %c0_i32_0 = arith.constant 0 : i32
    return %arg0, %c0_i32 : i32, i32
  }
  func.func @transform_1(%arg0: i32, %arg1: i32) -> (i32, i32) {
    %c0_i32 = arith.constant 0 : i32
    %c0_i32_0 = arith.constant 0 : i32
    return %c0_i32, %arg1 : i32, i32
  }
  func.func @transform_2(%arg0: i32, %arg1: i32) -> (i32, i32) {
    %c0_i32 = arith.constant 0 : i32
    %c0_i32_0 = arith.constant 0 : i32
    return %c0_i32, %arg1 : i32, i32
  }
  func.func @transform_3(%arg0: i32, %arg1: i32) -> (i32, i32) {
    %c0_i32 = arith.constant 0 : i32
    %c0_i32_0 = arith.constant 0 : i32
    return %arg1, %c0_i32 : i32, i32
  }
  func.func @transform_4(%arg0: i32, %arg1: i32) -> (i32, i32) {
    %c0_i32 = arith.constant 0 : i32
    %c0_i32_0 = arith.constant 0 : i32
    %c0_i32_1 = arith.constant 0 : i32
    return %c0_i32, %c0_i32_0 : i32, i32
  }
  func.func @transform_5(%arg0: i32, %arg1: i32) -> (i32, i32) {
    %c0_i32 = arith.constant 0 : i32
    %c0_i32_0 = arith.constant 0 : i32
    return %arg0, %c0_i32 : i32, i32
  }
}

</mosaic_0001>

<bundles_post_ra>
// kernel: mlp_pallas.1
= control target key start
LH: loop header
LB: loop body
LE: loop exit
PB: predicated region body
PF: predicated region fallthrough
CT: control target
= control target key end

     0   :  { %10 = vsyncpa [#allocation3], 0  ;;  %s566_s0 = inlined_call_operand.vmem [shape: bf16[16,128], index: 0, kind: input, shape index: {}]   ;;  %s567_s1 = inlined_call_operand.hbm [shape: bf16[128,128], index: 1, kind: input, shape index: {}]   ;;  %s568_s2 = inlined_call_operand.vmem [shape: f32[1,128], index: 2, kind: input, shape index: {}]   ;;  %s569_s3 = inlined_call_operand.hbm [shape: bf16[128,128], index: 3, kind: input, shape index: {}]   ;;  %s570_s4 = inlined_call_operand.vmem [shape: f32[1,128], index: 4, kind: input, shape index: {}]   ;;  %s571_s5 = inlined_call_operand.hbm [shape: f32[16,128], index: 5, kind: output, shape index: {}]  }
   0x1   :  { %11 = vsyncpa [#allocation6], 0 }
   0x2   :  { %12 = vsyncpa [#allocation4], 0  ;;  %s509_s18 = smov [#allocation2]  }
   0x3   :  { %s20_s19 = sshll.u32 %s509_s18, 4  ;;  %s21_s19 = int_to_ptr.vmem [resolvable:$true] %s20_s19 }
   0x4   :  { %s451_s20 = scalar_lea.vmem %s21_s19, 1024  ;;  %p456_p1 = scmp.lt.s32.totalorder %s21_s19, %s21_s19 }
   0x5   :  { %p452_p0 = scmp.ne.s32.totalorder %s21_s19, %s451_s20  ;;  %p457_p2 = scmp.lt.s32.totalorder %s451_s20, %s451_s20 }
   0x7   :  { %p458_p3 = por %p457_p2, %p456_p1 }
   0x9   :  { %p459_p4 = pnand %p458_p3, %p452_p0 }
   0xb   :  { %462 = shalt.err (!%p459_p4)
}
   0xc   :  { %s510_s21 = smov 64   ;;  %s511_s22 = smov 4  }
   0xd   :  { %26 = dma.hbm_to_vmem [thread:$0]  %s567_s1, 1024, %s21_s19, [#allocation3], %s510_s21, %s510_s21, %s511_s22  }
   0xe   :  { %s512_s25 = smov [#allocation5]  }
   0xf   :  { %s34_s26 = sshll.u32 %s512_s25, 4  ;;  %s35_s26 = int_to_ptr.vmem [resolvable:$true] %s34_s26 }
  0x10   :  { %s471_s27 = scalar_lea.vmem %s35_s26, 1024  ;;  %p476_p6 = scmp.lt.s32.totalorder %s35_s26, %s35_s26 }
  0x11   :  { %p472_p5 = scmp.ne.s32.totalorder %s35_s26, %s471_s27  ;;  %p477_p7 = scmp.lt.s32.totalorder %s471_s27, %s471_s27 }
  0x13   :  { %p478_p8 = por %p477_p7, %p476_p6 }
  0x15   :  { %p479_p9 = pnand %p478_p8, %p472_p5 }
  0x17   :  { %482 = shalt.err (!%p479_p9)
}
  0x18   :  { %40 = dma.hbm_to_vmem [thread:$0]  %s569_s3, 1024, %s35_s26, [#allocation6], %s510_s21, %s510_s21, %s511_s22  }
  0x19   :  { %503 = dma.done.wait [#allocation3], 1024  }
  0x1a   :  { %504 = vsyncadd [#allocation3], 4294966272 }
  0x1b   :  { %505 = dma.done.wait [#allocation6], 1024  }
  0x1c   :  { %506 = vsyncadd [#allocation6], 4294966272  ;;  %v513_v0 = vmov 0.0   ;;  %vm514_vm0 = vmmov 0   ;;  %v422_v1 = vld [vmem:[#allocation2 + $0x38] sm:$0xff]   ;;  %v423_v2 = vld [vmem:[#allocation2 + $0x30] sm:$0xff]  }
  0x1d   :  { %373 = vmatprep.subr.bf16.mxu0 %v513_v0  ;;  %389 = vmatprep.mubr.msk.bf16.mxu0 %vm514_vm0, %v513_v0  ;;  %v424_v3 = vld [vmem:[#allocation2 + $0x28] sm:$0xff]   ;;  %v431_v4 = vld [vmem:[#allocation5 + $0x38] sm:$0xff]   ;;  %v425_v5 = vld [vmem:[#allocation2 + $0x20] sm:$0xff]   ;;  %s515_s7 = smov [#allocation7]  }
  0x1e   :  { %393 = vmatprep.subr.bf16.mxu1 %v513_v0  ;;  %409 = vmatprep.mubr.msk.bf16.mxu1 %vm514_vm0, %v513_v0  ;;  %v426_v6 = vld [vmem:[#allocation2 + $0x18] sm:$0xff]   ;;  %v427_v7 = vld [vmem:[#allocation2 + $0x10] sm:$0xff]   ;;  %v428_v8 = vld [vmem:[#allocation2 + $0x8] sm:$0xff]   ;;  %s323_s8 = sshll.u32 %s515_s7, 4  ;;  %s324_s8 = int_to_ptr.vmem [resolvable:$true] %s323_s8 }
  0x1f   :  { %374 = vmatpush3.bf16.msra.mxu0 %v422_v1  ;;  %394 = vmatpush3.bf16.msra.mxu1 %v431_v4  ;;  %v429_v9 = vld [vmem:[#allocation2] sm:$0xff]   ;;  %v432_v11 = vld [vmem:[#allocation5 + $0x30] sm:$0xff]   ;;  %v433_v12 = vld [vmem:[#allocation5 + $0x28] sm:$0xff]   ;;  %s483_s9 = scalar_lea.vmem %s324_s8, 256  ;;  %p488_p11 = scmp.lt.s32.totalorder %s324_s8, %s324_s8 }
  0x20   :  { %375 = vmatprep.subr.bf16.mxu0 %v513_v0  ;;  %395 = vmatprep.subr.bf16.mxu1 %v513_v0  ;;  %v430_v10 = vld [vmem:[%s566_s0] sm:$0xff]   ;;  %v435_v14 = vld [vmem:[#allocation5 + $0x18] sm:$0xff]   ;;  %v436_v15 = vld [vmem:[#allocation5 + $0x10] sm:$0xff]   ;;  %p484_p10 = scmp.ne.s32.totalorder %s324_s8, %s483_s9  ;;  %p489_p12 = scmp.lt.s32.totalorder %s483_s9, %s483_s9 }
  0x21   :  { %v434_v13 = vld [vmem:[#allocation5 + $0x20] sm:$0xff]   ;;  %v437_v16 = vld [vmem:[#allocation5 + $0x8] sm:$0xff]  }
  0x22   :  { %v438_v17 = vld [vmem:[#allocation5] sm:$0xff]   ;;  %p490_p13 = por %p489_p12, %p488_p11 }
  0x23   :  { %376 = vmatpush3.bf16.msra.mxu0 %v423_v2  ;;  %396 = vmatpush3.bf16.msra.mxu1 %v432_v11  ;;  %v336_v18 = vld [vmem:[%s568_s2] ss:$0 sm:$0xff] }
  0x24   :  { %377 = vmatprep.subr.bf16.mxu0 %v513_v0  ;;  %397 = vmatprep.subr.bf16.mxu1 %v513_v0  ;;  %v354_v36 = vld [vmem:[%s570_s4] ss:$0 sm:$0xff]  ;;  %p491_p0 = pnand %p490_p13, %p484_p10 }
  0x27   :  { %378 = vmatpush3.bf16.msra.mxu0 %v424_v3  ;;  %398 = vmatpush3.bf16.msra.mxu1 %v433_v12 }
  0x28   :  { %379 = vmatprep.subr.bf16.mxu0 %v513_v0  ;;  %399 = vmatprep.subr.bf16.mxu1 %v513_v0 }
  0x2b   :  { %380 = vmatpush3.bf16.msra.mxu0 %v425_v5  ;;  %400 = vmatpush3.bf16.msra.mxu1 %v434_v13 }
  0x2c   :  { %381 = vmatprep.subr.bf16.mxu0 %v513_v0  ;;  %401 = vmatprep.subr.bf16.mxu1 %v513_v0 }
  0x2f   :  { %382 = vmatpush3.bf16.msra.mxu0 %v426_v6  ;;  %402 = vmatpush3.bf16.msra.mxu1 %v435_v14 }
  0x30   :  { %383 = vmatprep.subr.bf16.mxu0 %v513_v0  ;;  %403 = vmatprep.subr.bf16.mxu1 %v513_v0 }
  0x33   :  { %384 = vmatpush3.bf16.msra.mxu0 %v427_v7  ;;  %404 = vmatpush3.bf16.msra.mxu1 %v436_v15 }
  0x34   :  { %385 = vmatprep.subr.bf16.mxu0 %v513_v0  ;;  %405 = vmatprep.subr.bf16.mxu1 %v513_v0 }
  0x37   :  { %386 = vmatpush3.bf16.msra.mxu0 %v428_v8  ;;  %406 = vmatpush3.bf16.msra.mxu1 %v437_v16 }
  0x38   :  { %387 = vmatprep.subr.bf16.mxu0 %v513_v0  ;;  %407 = vmatprep.subr.bf16.mxu1 %v513_v0 }
  0x3b   :  { %388 = vmatpush3.bf16.msra.mxu0 %v429_v9  ;;  %408 = vmatpush3.bf16.msra.mxu1 %v438_v17 }
  0x3e   :  { %390 = vmatmul.mubr.bf16.vlgmr.msra.gmra.mxu0 %v430_v10 }
  0xfe   :  { %v163_v19 = vpop.f32.mrf.mxu0 }
  0xff   :  { %v164_v20 = vadd.f32 %v336_v18, %v163_v19 }
 0x100   :  { %v391_v21 = vpop.f32.mrf.mxu0 }
 0x101   :  { %v172_v22 = vmul.f32 0.70710677, %v164_v20  ;;  %v170_v30 = vmul.f32 0.5, %v164_v20 }
 0x102   :  { %v166_v23 = vpop.f32.mrf.mxu0 }
 0x103   :  { %439 = verf.f32 %v172_v22  ;;  %v167_v24 = vadd.f32 %v336_v18, %v166_v23 }
 0x104   :  { %v392_v25 = vpop.f32.mrf.mxu0 }
 0x105   :  { %v173_v26 = vmul.f32 0.70710677, %v167_v24  ;;  %v171_v31 = vmul.f32 0.5, %v167_v24 }
 0x107   :  { %441 = verf.f32 %v173_v26 }
 0x110   :  { %v440_v27 = vpop.eup %439 }
 0x111   :  { %v176_v28 = vadd.f32 1.0, %v440_v27 }
 0x113   :  { %v178_v33 = vmul.f32 %v176_v28, %v170_v30 }
 0x114   :  { %v442_v29 = vpop.eup %441 }
 0x115   :  { %v177_v32 = vadd.f32 1.0, %v442_v29 }
 0x117   :  { %v179_v34 = vmul.f32 %v177_v32, %v171_v31 }
 0x119   :  { %v180_v35 = vpack.c.bf16 %v179_v34, %v178_v33 }
 0x11b   :  { %410 = vmatmul.mubr.bf16.vlgmr.msra.gmra.mxu1 %v180_v35 }
 0x1db   :  { %v279_v37 = vpop.f32.mrf.mxu1 }
 0x1dc   :  { %v314_v38 = vadd.f32 %v354_v36, %v279_v37 }
 0x1dd   :  { %v411_v39 = vpop.f32.mrf.mxu1 }
 0x1de   :  { %316 = vst [vmem:[#allocation7] sm:$0xff] %v314_v38 }
 0x1df   :  { %v282_v40 = vpop.f32.mrf.mxu1 }
 0x1e0   :  { %v315_v41 = vadd.f32 %v354_v36, %v282_v40 }
 0x1e1   :  { %v412_v42 = vpop.f32.mrf.mxu1 }
 0x1e2   :  { %317 = vst [vmem:[#allocation7 + $0x8] sm:$0xff] %v315_v41 }
 0x1e3   :  { %494 = shalt.err (!%p491_p0)
}
 0x1e4   :  { %s516_s10 = smov 128   ;;  %s517_s4 = smov 8  }
 0x1e5   :  { %329 = dma.vmem_to_hbm [thread:$0]  %s324_s8, 256, %s571_s5, [#allocation4], %s516_s10, %s516_s10, %s517_s4  }
 0x1e6   :  { %507 = dma.done.wait [#allocation4], 256  }
 0x1e7   :  { %508 = vsyncadd [#allocation4], 4294967040 }
 0x1e8   :  { %333 = vsyncpa [#allocation3], 1 }
 0x1e9   :  { %334 = vsyncpa [#allocation6], 1 }
 0x1ea   :  { %335 = vsyncpa [#allocation4], 1 }

</bundles_post_ra>
